<compile_context>
chip_gen: v6e
topology: v6e:2x2x1
jax: 0.10.0
libtpu: 0.0.40
codegen_flags: <defaults>
</compile_context>

<pallas_src>
import functools

import jax
import jax.numpy as jnp
from jax.experimental import pallas as pl
from jax.experimental.pallas import tpu as pltpu

_NUM_LANES = 128
_NUM_MOMENT_COLS = 5          # [ones, x_lo, y_lo, x_hi, y_hi]
_HI_BASE = 256.0              # coordinate hi/lo split base (exact in bf16)
_TARGET_GRID_STEPS = 8        # enough steps to fill the pipeline / 2 TCs
_MIN_BLOCK_BYTES = 512 << 10  # amortize ~0.35us per-grid-step overhead


def _round_up(x, m):
    return (x + m - 1) // m * m


def _moments_kernel(hm_ref, w_ref, out_ref, *, split_f32_lhs):
    """(rt, H*W) @ (H*W, 128) -> (rt, 128) raw-moment matmul on the MXU."""
    w = w_ref[...]
    if split_f32_lhs:
        # f32 LHS -> bf16 hi/lo split (lo = exact residual); the RHS is exact
        # in bf16, so two bf16 MXU passes + f32 accumulation reproduce f32
        # accuracy to ~2^-18 relative at 1/3 the MXU work of Precision.HIGHEST.
        hm = hm_ref[...]
        hi = hm.astype(jnp.bfloat16)
        lo = (hm - hi.astype(jnp.float32)).astype(jnp.bfloat16)
        out_ref[...] = (
            jnp.dot(hi, w, preferred_element_type=jnp.float32)
            + jnp.dot(lo, w, preferred_element_type=jnp.float32))
    else:
        out_ref[...] = jnp.dot(hm_ref[...], w,
                               preferred_element_type=jnp.float32)


def _coordinate_weights(H, W):
    """(H*W, 128) bf16 weight: columns [1, x_lo, y_lo, x_hi, y_hi, 0, ...]."""
    idx = jnp.arange(H * W, dtype=jnp.int32)
    x = idx % W
    y = idx // W
    cols = jnp.stack(
        [jnp.ones((H * W,), jnp.float32),
         (x % 256).astype(jnp.float32), (y % 256).astype(jnp.float32),
         (x // 256).astype(jnp.float32), (y // 256).astype(jnp.float32)],
        axis=1)
    cols = jnp.pad(cols, ((0, 0), (0, _NUM_LANES - _NUM_MOMENT_COLS)))
    return cols.astype(jnp.bfloat16)   # every used value <= 255 -> exact


def tree_to_vector(heatmaps, input_size):
    """Pallas equivalent of TreeToVector.forward(heatmaps, cuda)."""
    B, C, H, W = heatmaps.shape
    assert H == W, "reference implementation implicitly requires H == W"

    orig_dtype = heatmaps.dtype
    if orig_dtype == jnp.bfloat16:
        hm = heatmaps                # 2-byte HBM reads, weights exact in bf16
        split_f32_lhs = False
    elif orig_dtype == jnp.float32:
        hm = heatmaps                # no upcast copy; hi/lo split in-kernel
        split_f32_lhs = True
    else:
        # TODO(synk): fp16/other inputs still take a full-tensor upcast pass;
        # an in-kernel convert would keep the 2-byte HBM read path.
        hm = heatmaps.astype(jnp.float32)
        split_f32_lhs = True

    rows = B * C
    hw = H * W
    itemsize = jnp.dtype(hm.dtype).itemsize
    bytes_per_row = hw * itemsize

    # Lane-dense flatten (pure layout plumbing): (B, C, H, W) -> (B*C, H*W).
    hm_flat = hm.reshape(rows, hw)

    # ---- Row-tile sizing -------------------------------------------------
    try:
        vmem_cap = int(pltpu.get_tpu_info().vmem_capacity_bytes)
    except Exception:
        vmem_cap = 64 << 20                      # conservative (v7x-sized)
    target_block_bytes = (8 << 20) if vmem_cap >= (100 << 20) else (4 << 20)

    rt_cap = max(8, (target_block_bytes // bytes_per_row) // 8 * 8)
    rt_steps = _round_up(pl.cdiv(rows, _TARGET_GRID_STEPS), 8)
    rt_floor = _round_up(pl.cdiv(_MIN_BLOCK_BYTES, bytes_per_row), 8)
    rt = min(rt_cap, rt_steps)                   # keep >= ~8 grid steps
    rt = max(rt, min(rt_floor, rt_cap), 8)       # but blocks >= ~512 KiB
    if rt >= rows:
        rt = rows                                # single full-extent block
    # Last block may be partial: OOB reads only feed rows we never consume,
    # OOB stores are masked.  No jnp.pad copy of the (B*C, H*W) slab.
    grid = (pl.cdiv(rows, rt),)

    weights = _coordinate_weights(H, W)
    weight_buf_bytes = hw * _NUM_LANES * 2       # bf16
    in_block_bytes = rt * bytes_per_row
    out_block_bytes = rt * _NUM_LANES * 4
    # hi/lo split materializes roughly one extra block worth of bf16 temps.
    scratch_bytes = in_block_bytes if split_f32_lhs else 0

    def vmem_limit(weight_bufs):
        need = (2 * in_block_bytes + weight_bufs * weight_buf_bytes
                + 2 * out_block_bytes + scratch_bytes + (2 << 20))
        return int(min(max(need, 16 << 20), 128 << 20))

    cost = pl.CostEstimate(
        flops=2 * rows * hw * _NUM_LANES * (2 if split_f32_lhs else 1),
        transcendentals=0,
        bytes_accessed=rows * bytes_per_row + weight_buf_bytes
        + rows * _NUM_LANES * 4)

    kernel = functools.partial(_moments_kernel, split_f32_lhs=split_f32_lhs)

    def run(weight_pipeline_mode, weight_bufs):
        # TODO(synk): for very large heatmaps (H*W >= ~64k) a second
        # "arbitrary" grid axis over H*W chunks with a VMEM accumulator would
        # avoid keeping the whole (H*W, 128) weight resident.
        w_kwargs = ({} if weight_pipeline_mode is None
                    else {"pipeline_mode": weight_pipeline_mode})
        return pl.pallas_call(
            kernel,
            out_shape=jax.ShapeDtypeStruct((rows, _NUM_LANES), jnp.float32),
            grid=grid,
            in_specs=[
                pl.BlockSpec((rt, hw), lambda i: (i, 0)),
                pl.BlockSpec((hw, _NUM_LANES), lambda i: (0, 0), **w_kwargs),
            ],
            out_specs=pl.BlockSpec((rt, _NUM_LANES), lambda i: (i, 0)),
            compiler_params=pltpu.CompilerParams(
                dimension_semantics=("parallel",),
                vmem_limit_bytes=vmem_limit(weight_bufs)),
            cost_estimate=cost,
        )(hm_flat, weights)

    try:
        # Constant index_map -> the weight never changes; single-buffer it.
        moments = run(pl.Buffered(1), 1)
    except Exception:
        # JAX version without BlockSpec pipeline_mode: default buffering.
        moments = run(None, 2)

    # Tiny epilogue: one divide per joint coordinate (vs. a full B*C*H*W
    # tensor of divides in the reference).
    s = moments[:, 0]
    xnum = moments[:, 1] + _HI_BASE * moments[:, 3]
    ynum = moments[:, 2] + _HI_BASE * moments[:, 4]
    denom = s * jnp.float32(input_size)
    x = (xnum / denom).reshape(B, C)
    y = (ynum / denom).reshape(B, C)
    # cat -> view -> transpose -> view  ==  interleave [x0, y0, x1, y1, ...]
    vec = jnp.stack([x, y], axis=-1).reshape(B, 2 * C)
    if jnp.issubdtype(orig_dtype, jnp.floating) and orig_dtype != jnp.float32:
        vec = vec.astype(orig_dtype)
    return vec


def _reference(heatmaps, input_size):
    """Plain-JAX reference mirroring the PyTorch forward, for verification."""
    B, C, H, W = heatmaps.shape
    sums = jnp.sum(heatmaps, axis=(2, 3), keepdims=True)
    normalized = heatmaps / sums
    arr = jnp.arange(W, dtype=jnp.float32)[None, None, :]
    x_prob = jnp.sum(normalized, axis=2)
    y_prob = jnp.sum(normalized, axis=3)
    x = jnp.sum(arr * x_prob, axis=2)
    y = jnp.sum(arr * y_prob, axis=2)
    vector = jnp.concatenate([x, y], axis=1)
    vector = jnp.transpose(vector.reshape(B, 2, C), (0, 2, 1)).reshape(B, -1)
    return vector / input_size


if __name__ == "__main__":
    key = jax.random.PRNGKey(0)
    B, C, H, W = 2, 4, 16, 16
    # positive "heatmap"-like values so the spatial sums are non-zero
    heatmaps = jax.random.uniform(
        key, (B, C, H, W), dtype=jnp.float32, minval=0.01, maxval=1.0
    )
    input_size = float(W)

    out = tree_to_vector(heatmaps, input_size)
    out = jax.block_until_ready(out)

    ref = _reference(heatmaps, input_size)
    assert out.shape == (B, 2 * C)
    assert jnp.allclose(out, ref, atol=1e-4, rtol=1e-4), (
        float(jnp.max(jnp.abs(out - ref))))

    print("KERNEL_OK")
</pallas_src>

<mosaic_0001>
module attributes {stable_mosaic.version = 11 : i64} {
  func.func @_moments_kernel(%arg0: i32, %arg1: memref<8x256xf32, #tpu.memory_space<vmem>>, %arg2: memref<256x128xbf16, #tpu.memory_space<vmem>>, %arg3: memref<8x128xf32, #tpu.memory_space<vmem>>) attributes {dimension_semantics = [#tpu.dimension_semantics<parallel>], iteration_bounds = array<i64: 1>, scalar_prefetch = 0 : i64, scratch_operands = 0 : i64, tpu.core_type = #tpu.core_type<tc>, window_params = [{transform_indices = @transform_0, window_bounds = array<i64: 8, 256>}, {pipeline_mode = #tpu.pipeline_mode<synchronous>, transform_indices = @transform_1, window_bounds = array<i64: 256, 128>}, {transform_indices = @transform_2, window_bounds = array<i64: 8, 128>}]} {
    %c0 = arith.constant 0 : index
    %c0_0 = arith.constant 0 : index
    %0 = vector.load %arg2[%c0, %c0_0] : memref<256x128xbf16, #tpu.memory_space<vmem>>, vector<256x128xbf16>
    %c0_1 = arith.constant 0 : index
    %c0_2 = arith.constant 0 : index
    %1 = vector.load %arg1[%c0_1, %c0_2] : memref<8x256xf32, #tpu.memory_space<vmem>>, vector<8x256xf32>
    %2 = arith.truncf %1 : vector<8x256xf32> to vector<8x256xbf16>
    %3 = arith.extf %2 : vector<8x256xbf16> to vector<8x256xf32>
    %4 = arith.subf %1, %3 : vector<8x256xf32>
    %5 = arith.truncf %4 : vector<8x256xf32> to vector<8x256xbf16>
    %cst = arith.constant dense<0.000000e+00> : vector<8x128xf32>
    %6 = tpu.matmul %2, %0, %cst {dimension_numbers = #tpu.dot_dimension_numbers<[1], [0], [0], [1], [0, 0, 1, 1], [], []>} : vector<8x256xbf16>, vector<256x128xbf16>, vector<8x128xf32> -> vector<8x128xf32>
    %cst_3 = arith.constant dense<0.000000e+00> : vector<8x128xf32>
    %7 = tpu.matmul %5, %0, %cst_3 {dimension_numbers = #tpu.dot_dimension_numbers<[1], [0], [0], [1], [0, 0, 1, 1], [], []>} : vector<8x256xbf16>, vector<256x128xbf16>, vector<8x128xf32> -> vector<8x128xf32>
    %8 = arith.addf %6, %7 : vector<8x128xf32>
    %c0_4 = arith.constant 0 : index
    %c0_5 = arith.constant 0 : index
    %9 = vector.load %arg3[%c0_4, %c0_5] : memref<8x128xf32, #tpu.memory_space<vmem>>, vector<8x128xf32>
    tpu.vector_store %arg3[%c0_4, %c0_5], %8 {strides = array<i32>} : memref<8x128xf32, #tpu.memory_space<vmem>>, vector<8x128xf32>,
    return
  }
  func.func @transform_0(%arg0: i32) -> (i32, i32) {
    %c0_i32 = arith.constant 0 : i32
    %c0_i32_0 = arith.constant 0 : i32
    return %arg0, %c0_i32 : i32, i32
  }
  func.func @transform_1(%arg0: i32) -> (i32, i32) {
    %c0_i32 = arith.constant 0 : i32
    %c0_i32_0 = arith.constant 0 : i32
    %c0_i32_1 = arith.constant 0 : i32
    return %c0_i32, %c0_i32_0 : i32, i32
  }
  func.func @transform_2(%arg0: i32) -> (i32, i32) {
    %c0_i32 = arith.constant 0 : i32
    %c0_i32_0 = arith.constant 0 : i32
    return %arg0, %c0_i32 : i32, i32
  }
}

module attributes {stable_mosaic.version = 11 : i64} {
  func.func @_moments_kernel(%arg0: i32, %arg1: memref<8x256xf32, #tpu.memory_space<vmem>>, %arg2: memref<256x128xbf16, #tpu.memory_space<vmem>>, %arg3: memref<8x128xf32, #tpu.memory_space<vmem>>) attributes {dimension_semantics = [#tpu.dimension_semantics<parallel>], iteration_bounds = array<i64: 1>, scalar_prefetch = 0 : i64, scratch_operands = 0 : i64, tpu.core_type = #tpu.core_type<tc>, window_params = [{transform_indices = @transform_0, window_bounds = array<i64: 8, 256>}, {pipeline_mode = #tpu.pipeline_mode<synchronous>, transform_indices = @transform_1, window_bounds = array<i64: 256, 128>}, {transform_indices = @transform_2, window_bounds = array<i64: 8, 128>}]} {
    %c0 = arith.constant 0 : index
    %c0_0 = arith.constant 0 : index
    %0 = vector.load %arg2[%c0, %c0_0] : memref<256x128xbf16, #tpu.memory_space<vmem>>, vector<256x128xbf16>
    %c0_1 = arith.constant 0 : index
    %c0_2 = arith.constant 0 : index
    %1 = vector.load %arg1[%c0_1, %c0_2] : memref<8x256xf32, #tpu.memory_space<vmem>>, vector<8x256xf32>
    %2 = arith.truncf %1 : vector<8x256xf32> to vector<8x256xbf16>
    %3 = arith.extf %2 : vector<8x256xbf16> to vector<8x256xf32>
    %4 = arith.subf %1, %3 : vector<8x256xf32>
    %5 = arith.truncf %4 : vector<8x256xf32> to vector<8x256xbf16>
    %cst = arith.constant dense<0.000000e+00> : vector<8x128xf32>
    %6 = tpu.matmul %2, %0, %cst {dimension_numbers = #tpu.dot_dimension_numbers<[1], [0], [0], [1], [0, 0, 1, 1], [], []>} : vector<8x256xbf16>, vector<256x128xbf16>, vector<8x128xf32> -> vector<8x128xf32>
    %cst_3 = arith.constant dense<0.000000e+00> : vector<8x128xf32>
    %7 = tpu.matmul %5, %0, %cst_3 {dimension_numbers = #tpu.dot_dimension_numbers<[1], [0], [0], [1], [0, 0, 1, 1], [], []>} : vector<8x256xbf16>, vector<256x128xbf16>, vector<8x128xf32> -> vector<8x128xf32>
    %8 = arith.addf %6, %7 : vector<8x128xf32>
    %c0_4 = arith.constant 0 : index
    %c0_5 = arith.constant 0 : index
    %9 = vector.load %arg3[%c0_4, %c0_5] : memref<8x128xf32, #tpu.memory_space<vmem>>, vector<8x128xf32>
    tpu.vector_store %arg3[%c0_4, %c0_5], %8 {strides = array<i32>} : memref<8x128xf32, #tpu.memory_space<vmem>>, vector<8x128xf32>,
    return
  }
  func.func @transform_0(%arg0: i32) -> (i32, i32) {
    %c0_i32 = arith.constant 0 : i32
    %c0_i32_0 = arith.constant 0 : i32
    return %arg0, %c0_i32 : i32, i32
  }
  func.func @transform_1(%arg0: i32) -> (i32, i32) {
    %c0_i32 = arith.constant 0 : i32
    %c0_i32_0 = arith.constant 0 : i32
    %c0_i32_1 = arith.constant 0 : i32
    return %c0_i32, %c0_i32_0 : i32, i32
  }
  func.func @transform_2(%arg0: i32) -> (i32, i32) {
    %c0_i32 = arith.constant 0 : i32
    %c0_i32_0 = arith.constant 0 : i32
    return %arg0, %c0_i32 : i32, i32
  }
}

</mosaic_0001>

<bundles_post_ra>
// kernel: tpu_custom_call.1
= control target key start
LH: loop header
LB: loop body
LE: loop exit
PB: predicated region body
PF: predicated region fallthrough
CT: control target
= control target key end

     0   :  { %7 = vsyncpa [#allocation3], 0  ;;  %s450_s0 = inlined_call_operand.hbm [shape: f32[8,256], index: 0, kind: input, shape index: {}]   ;;  %s451_s1 = inlined_call_operand.hbm [shape: bf16[256,128], index: 1, kind: input, shape index: {}]   ;;  %s452_s2 = inlined_call_operand.hbm [shape: f32[8,128], index: 2, kind: output, shape index: {}]  }
   0x1   :  { %8 = vsyncpa [#allocation6], 0 }
   0x2   :  { %9 = vsyncpa [#allocation4], 0  ;;  %s421_s9 = smov [#allocation2]   ;;  %s422_s11 = smov [#allocation5]  }
   0x3   :  { %s16_s10 = sshll.u32 %s421_s9, 4  ;;  %s25_s12 = sshll.u32 %s422_s11, 4  ;;  %s17_s10 = int_to_ptr.vmem [resolvable:$true] %s16_s10  ;;  %s26_s12 = int_to_ptr.vmem [resolvable:$true] %s25_s12 }
   0x4   :  { %s363_s13 = scalar_lea.vmem %s17_s10, 256  ;;  %p368_p1 = scmp.lt.s32.totalorder %s17_s10, %s17_s10 }
   0x5   :  { %p364_p0 = scmp.ne.s32.totalorder %s17_s10, %s363_s13  ;;  %p369_p2 = scmp.lt.s32.totalorder %s363_s13, %s363_s13 }
   0x7   :  { %p370_p3 = por %p369_p2, %p368_p1 }
   0x9   :  { %p371_p4 = pnand %p370_p3, %p364_p0 }
   0xb   :  { %374 = shalt.err (!%p371_p4)
}
   0xc   :  { %19 = dma.hbm_to_vmem [thread:$0]  %s450_s0, 256, %s17_s10, [#allocation3]  }
   0xd   :  { %s383_s16 = scalar_lea.vmem %s26_s12, 2048  ;;  %p388_p6 = scmp.lt.s32.totalorder %s26_s12, %s26_s12 }
   0xe   :  { %p384_p5 = scmp.ne.s32.totalorder %s26_s12, %s383_s16  ;;  %p389_p7 = scmp.lt.s32.totalorder %s383_s16, %s383_s16 }
  0x10   :  { %p390_p8 = por %p389_p7, %p388_p6 }
  0x12   :  { %p391_p9 = pnand %p390_p8, %p384_p5 }
  0x14   :  { %394 = shalt.err (!%p391_p9)
}
  0x15   :  { %s423_s17 = smov 64   ;;  %s424_s18 = smov 4  }
  0x16   :  { %31 = dma.hbm_to_vmem [thread:$0]  %s451_s1, 2048, %s26_s12, [#allocation6], %s423_s17, %s423_s17, %s424_s18  }
  0x17   :  { %415 = dma.done.wait [#allocation3], 256  }
  0x18   :  { %416 = vsyncadd [#allocation3], 4294967040 }
  0x19   :  { %417 = dma.done.wait [#allocation6], 2048  }
  0x1a   :  { %418 = vsyncadd [#allocation6], 4294965248  ;;  %v339_v0 = vld [vmem:[#allocation5 + $0x78] sm:$0xff]   ;;  %v341_v2 = vld [vmem:[#allocation5 + $0x70] sm:$0xff]   ;;  %s425_s0 = smov [#allocation7]  }
  0x1b   :  { %v340_v1 = vld [vmem:[#allocation5 + $0x38] sm:$0xff]   ;;  %290 = vmatprep.subr.bf16.mxu0 %v339_v0  ;;  %312 = vmatprep.subr.bf16.mxu1 %v339_v0  ;;  %v342_v3 = vld [vmem:[#allocation5 + $0x30] sm:$0xff]   ;;  %v343_v4 = vld [vmem:[#allocation5 + $0x68] sm:$0xff]   ;;  %s264_s1 = sshll.u32 %s425_s0, 4  ;;  %s265_s1 = int_to_ptr.vmem [resolvable:$true] %s264_s1 }
  0x1c   :  { %291 = vmatpush3.bf16.msra.mxu0 %v340_v1  ;;  %313 = vmatpush3.bf16.msra.mxu1 %v340_v1  ;;  %v344_v5 = vld [vmem:[#allocation5 + $0x28] sm:$0xff]   ;;  %v345_v6 = vld [vmem:[#allocation5 + $0x60] sm:$0xff]   ;;  %v347_v8 = vld [vmem:[#allocation5 + $0x58] sm:$0xff]   ;;  %s395_s21 = scalar_lea.vmem %s265_s1, 128  ;;  %p400_p11 = scmp.lt.s32.totalorder %s265_s1, %s265_s1 }
  0x1d   :  { %292 = vmatprep.subr.bf16.mxu0 %v341_v2  ;;  %314 = vmatprep.subr.bf16.mxu1 %v341_v2  ;;  %v346_v7 = vld [vmem:[#allocation5 + $0x20] sm:$0xff]   ;;  %v348_v9 = vld [vmem:[#allocation5 + $0x18] sm:$0xff]   ;;  %v349_v10 = vld [vmem:[#allocation5 + $0x50] sm:$0xff]   ;;  %p396_p10 = scmp.ne.s32.totalorder %s265_s1, %s395_s21  ;;  %p401_p12 = scmp.lt.s32.totalorder %s395_s21, %s395_s21 }
  0x1e   :  { %v72_v11 = vld [vmem:[#allocation2 + $0x8] sm:$0xff]  ;;  %v71_v12 = vld [vmem:[#allocation2] sm:$0xff]  ;;  %v351_v17 = vld [vmem:[#allocation5 + $0x48] sm:$0xff]  }
  0x1f   :  { %v74_v13 = vpack.c.bf16 %v72_v11, %v72_v11  ;;  %v73_v14 = vpack.c.bf16 %v71_v12, %v71_v12  ;;  %v350_v15 = vld [vmem:[#allocation5 + $0x10] sm:$0xff]   ;;  %v352_v20 = vld [vmem:[#allocation5 + $0x8] sm:$0xff]   ;;  %v353_v22 = vld [vmem:[#allocation5 + $0x40] sm:$0xff]   ;;  %p402_p13 = por %p401_p12, %p400_p11 }
  0x20   :  { %293 = vmatpush3.bf16.msra.mxu0 %v342_v3  ;;  %315 = vmatpush3.bf16.msra.mxu1 %v342_v3  ;;  %v354_v24 = vld [vmem:[#allocation5] sm:$0xff]  }
  0x21   :  { %294 = vmatprep.subr.bf16.mxu0 %v343_v4  ;;  %316 = vmatprep.subr.bf16.mxu1 %v343_v4  ;;  %v76_v16 = vunpack.c.l.bf16 %v74_v13  ;;  %v75_v19 = vunpack.c.l.bf16 %v73_v14  ;;  %p403_p0 = pnand %p402_p13, %p396_p10 }
  0x22   :  { %249 = vmatprep.mubr.bf16.mxu1 %v74_v13 }
  0x23   :  { %v78_v18 = vsub.f32 %v72_v11, %v76_v16  ;;  %v77_v23 = vsub.f32 %v71_v12, %v75_v19 }
  0x24   :  { %295 = vmatpush3.bf16.msra.mxu0 %v344_v5  ;;  %317 = vmatpush3.bf16.msra.mxu1 %v344_v5 }
  0x25   :  { %296 = vmatprep.subr.bf16.mxu0 %v345_v6  ;;  %318 = vmatprep.subr.bf16.mxu1 %v345_v6  ;;  %v80_v21 = vpack.c.bf16 %v78_v18, %v78_v18  ;;  %v79_v25 = vpack.c.bf16 %v77_v23, %v77_v23 }
  0x27   :  { %209 = vmatprep.mubr.bf16.mxu0 %v80_v21 }
  0x28   :  { %297 = vmatpush3.bf16.msra.mxu0 %v346_v7  ;;  %319 = vmatpush3.bf16.msra.mxu1 %v346_v7 }
  0x29   :  { %298 = vmatprep.subr.bf16.mxu0 %v347_v8  ;;  %320 = vmatprep.subr.bf16.mxu1 %v347_v8 }
  0x2c   :  { %299 = vmatpush3.bf16.msra.mxu0 %v348_v9  ;;  %321 = vmatpush3.bf16.msra.mxu1 %v348_v9 }
  0x2d   :  { %300 = vmatprep.subr.bf16.mxu0 %v349_v10  ;;  %322 = vmatprep.subr.bf16.mxu1 %v349_v10 }
  0x30   :  { %301 = vmatpush3.bf16.msra.mxu0 %v350_v15  ;;  %323 = vmatpush3.bf16.msra.mxu1 %v350_v15 }
  0x31   :  { %302 = vmatprep.subr.bf16.mxu0 %v351_v17  ;;  %324 = vmatprep.subr.bf16.mxu1 %v351_v17 }
  0x34   :  { %303 = vmatpush3.bf16.msra.mxu0 %v352_v20  ;;  %325 = vmatpush3.bf16.msra.mxu1 %v352_v20 }
  0x35   :  { %304 = vmatprep.subr.bf16.mxu0 %v353_v22  ;;  %326 = vmatprep.subr.bf16.mxu1 %v353_v22 }
  0x38   :  { %305 = vmatpush3.bf16.msra.mxu0 %v354_v24  ;;  %327 = vmatpush3.bf16.msra.mxu1 %v354_v24 }
  0x3b   :  { %210 = vmatmul.mubr.bf16.vlgmr.msra.gmra.mxu0 %v79_v25  ;;  %250 = vmatmul.mubr.bf16.vlgmr.msra.gmra.mxu1 %v73_v14 }
  0xfb   :  { %v306_v26 = vpop.f32.mrf.mxu0  ;;  %v328_v27 = vpop.f32.mrf.mxu1 }
  0xfd   :  { %v307_v28 = vpop.f32.mrf.mxu0  ;;  %v329_v29 = vpop.f32.mrf.mxu1 }
  0xfe   :  { %v308_v30 = vadd.f32 %v307_v28, %v306_v26  ;;  %v330_v31 = vadd.f32 %v329_v29, %v328_v27 }
  0xff   :  { %v309_v32 = vpop.f32.mrf.mxu0  ;;  %v331_v33 = vpop.f32.mrf.mxu1 }
 0x100   :  { %v252_v34 = vadd.f32 %v330_v31, %v308_v30 }
 0x101   :  { %v310_v35 = vpop.f32.mrf.mxu0  ;;  %v332_v36 = vpop.f32.mrf.mxu1 }
 0x102   :  { %257 = vst [vmem:[#allocation7] sm:$0xff] %v252_v34 }
 0x103   :  { %406 = shalt.err (!%p403_p0)
}
 0x104   :  { %267 = dma.vmem_to_hbm [thread:$0]  %s265_s1, 128, %s452_s2, [#allocation4]  }
 0x105   :  { %419 = dma.done.wait [#allocation4], 128  }
 0x106   :  { %420 = vsyncadd [#allocation4], 4294967168 }
 0x107   :  { %271 = vsyncpa [#allocation3], 1 }
 0x108   :  { %272 = vsyncpa [#allocation6], 1 }
 0x109   :  { %273 = vsyncpa [#allocation4], 1 }

// kernel: tpu_custom_call.1
= control target key start
LH: loop header
LB: loop body
LE: loop exit
PB: predicated region body
PF: predicated region fallthrough
CT: control target
= control target key end

     0   :  { %7 = vsyncpa [#allocation3], 0  ;;  %s450_s0 = inlined_call_operand.hbm [shape: f32[8,256], index: 0, kind: input, shape index: {}]   ;;  %s451_s1 = inlined_call_operand.hbm [shape: bf16[256,128], index: 1, kind: input, shape index: {}]   ;;  %s452_s2 = inlined_call_operand.hbm [shape: f32[8,128], index: 2, kind: output, shape index: {}]  }
   0x1   :  { %8 = vsyncpa [#allocation6], 0 }
   0x2   :  { %9 = vsyncpa [#allocation4], 0  ;;  %s421_s9 = smov [#allocation2]   ;;  %s422_s11 = smov [#allocation5]  }
   0x3   :  { %s16_s10 = sshll.u32 %s421_s9, 4  ;;  %s25_s12 = sshll.u32 %s422_s11, 4  ;;  %s17_s10 = int_to_ptr.vmem [resolvable:$true] %s16_s10  ;;  %s26_s12 = int_to_ptr.vmem [resolvable:$true] %s25_s12 }
   0x4   :  { %s363_s13 = scalar_lea.vmem %s17_s10, 256  ;;  %p368_p1 = scmp.lt.s32.totalorder %s17_s10, %s17_s10 }
   0x5   :  { %p364_p0 = scmp.ne.s32.totalorder %s17_s10, %s363_s13  ;;  %p369_p2 = scmp.lt.s32.totalorder %s363_s13, %s363_s13 }
   0x7   :  { %p370_p3 = por %p369_p2, %p368_p1 }
   0x9   :  { %p371_p4 = pnand %p370_p3, %p364_p0 }
   0xb   :  { %374 = shalt.err (!%p371_p4)
}
   0xc   :  { %19 = dma.hbm_to_vmem [thread:$0]  %s450_s0, 256, %s17_s10, [#allocation3]  }
   0xd   :  { %s383_s16 = scalar_lea.vmem %s26_s12, 2048  ;;  %p388_p6 = scmp.lt.s32.totalorder %s26_s12, %s26_s12 }
   0xe   :  { %p384_p5 = scmp.ne.s32.totalorder %s26_s12, %s383_s16  ;;  %p389_p7 = scmp.lt.s32.totalorder %s383_s16, %s383_s16 }
  0x10   :  { %p390_p8 = por %p389_p7, %p388_p6 }
  0x12   :  { %p391_p9 = pnand %p390_p8, %p384_p5 }
  0x14   :  { %394 = shalt.err (!%p391_p9)
}
  0x15   :  { %s423_s17 = smov 64   ;;  %s424_s18 = smov 4  }
  0x16   :  { %31 = dma.hbm_to_vmem [thread:$0]  %s451_s1, 2048, %s26_s12, [#allocation6], %s423_s17, %s423_s17, %s424_s18  }
  0x17   :  { %415 = dma.done.wait [#allocation3], 256  }
  0x18   :  { %416 = vsyncadd [#allocation3], 4294967040 }
  0x19   :  { %417 = dma.done.wait [#allocation6], 2048  }
  0x1a   :  { %418 = vsyncadd [#allocation6], 4294965248  ;;  %v339_v0 = vld [vmem:[#allocation5 + $0x78] sm:$0xff]   ;;  %v341_v2 = vld [vmem:[#allocation5 + $0x70] sm:$0xff]   ;;  %s425_s0 = smov [#allocation7]  }
  0x1b   :  { %v340_v1 = vld [vmem:[#allocation5 + $0x38] sm:$0xff]   ;;  %290 = vmatprep.subr.bf16.mxu0 %v339_v0  ;;  %312 = vmatprep.subr.bf16.mxu1 %v339_v0  ;;  %v342_v3 = vld [vmem:[#allocation5 + $0x30] sm:$0xff]   ;;  %v343_v4 = vld [vmem:[#allocation5 + $0x68] sm:$0xff]   ;;  %s264_s1 = sshll.u32 %s425_s0, 4  ;;  %s265_s1 = int_to_ptr.vmem [resolvable:$true] %s264_s1 }
  0x1c   :  { %291 = vmatpush3.bf16.msra.mxu0 %v340_v1  ;;  %313 = vmatpush3.bf16.msra.mxu1 %v340_v1  ;;  %v344_v5 = vld [vmem:[#allocation5 + $0x28] sm:$0xff]   ;;  %v345_v6 = vld [vmem:[#allocation5 + $0x60] sm:$0xff]   ;;  %v347_v8 = vld [vmem:[#allocation5 + $0x58] sm:$0xff]   ;;  %s395_s21 = scalar_lea.vmem %s265_s1, 128  ;;  %p400_p11 = scmp.lt.s32.totalorder %s265_s1, %s265_s1 }
  0x1d   :  { %292 = vmatprep.subr.bf16.mxu0 %v341_v2  ;;  %314 = vmatprep.subr.bf16.mxu1 %v341_v2  ;;  %v346_v7 = vld [vmem:[#allocation5 + $0x20] sm:$0xff]   ;;  %v348_v9 = vld [vmem:[#allocation5 + $0x18] sm:$0xff]   ;;  %v349_v10 = vld [vmem:[#allocation5 + $0x50] sm:$0xff]   ;;  %p396_p10 = scmp.ne.s32.totalorder %s265_s1, %s395_s21  ;;  %p401_p12 = scmp.lt.s32.totalorder %s395_s21, %s395_s21 }
  0x1e   :  { %v72_v11 = vld [vmem:[#allocation2 + $0x8] sm:$0xff]  ;;  %v71_v12 = vld [vmem:[#allocation2] sm:$0xff]  ;;  %v351_v17 = vld [vmem:[#allocation5 + $0x48] sm:$0xff]  }
  0x1f   :  { %v74_v13 = vpack.c.bf16 %v72_v11, %v72_v11  ;;  %v73_v14 = vpack.c.bf16 %v71_v12, %v71_v12  ;;  %v350_v15 = vld [vmem:[#allocation5 + $0x10] sm:$0xff]   ;;  %v352_v20 = vld [vmem:[#allocation5 + $0x8] sm:$0xff]   ;;  %v353_v22 = vld [vmem:[#allocation5 + $0x40] sm:$0xff]   ;;  %p402_p13 = por %p401_p12, %p400_p11 }
  0x20   :  { %293 = vmatpush3.bf16.msra.mxu0 %v342_v3  ;;  %315 = vmatpush3.bf16.msra.mxu1 %v342_v3  ;;  %v354_v24 = vld [vmem:[#allocation5] sm:$0xff]  }
  0x21   :  { %294 = vmatprep.subr.bf16.mxu0 %v343_v4  ;;  %316 = vmatprep.subr.bf16.mxu1 %v343_v4  ;;  %v76_v16 = vunpack.c.l.bf16 %v74_v13  ;;  %v75_v19 = vunpack.c.l.bf16 %v73_v14  ;;  %p403_p0 = pnand %p402_p13, %p396_p10 }
  0x22   :  { %249 = vmatprep.mubr.bf16.mxu1 %v74_v13 }
  0x23   :  { %v78_v18 = vsub.f32 %v72_v11, %v76_v16  ;;  %v77_v23 = vsub.f32 %v71_v12, %v75_v19 }
  0x24   :  { %295 = vmatpush3.bf16.msra.mxu0 %v344_v5  ;;  %317 = vmatpush3.bf16.msra.mxu1 %v344_v5 }
  0x25   :  { %296 = vmatprep.subr.bf16.mxu0 %v345_v6  ;;  %318 = vmatprep.subr.bf16.mxu1 %v345_v6  ;;  %v80_v21 = vpack.c.bf16 %v78_v18, %v78_v18  ;;  %v79_v25 = vpack.c.bf16 %v77_v23, %v77_v23 }
  0x27   :  { %209 = vmatprep.mubr.bf16.mxu0 %v80_v21 }
  0x28   :  { %297 = vmatpush3.bf16.msra.mxu0 %v346_v7  ;;  %319 = vmatpush3.bf16.msra.mxu1 %v346_v7 }
  0x29   :  { %298 = vmatprep.subr.bf16.mxu0 %v347_v8  ;;  %320 = vmatprep.subr.bf16.mxu1 %v347_v8 }
  0x2c   :  { %299 = vmatpush3.bf16.msra.mxu0 %v348_v9  ;;  %321 = vmatpush3.bf16.msra.mxu1 %v348_v9 }
  0x2d   :  { %300 = vmatprep.subr.bf16.mxu0 %v349_v10  ;;  %322 = vmatprep.subr.bf16.mxu1 %v349_v10 }
  0x30   :  { %301 = vmatpush3.bf16.msra.mxu0 %v350_v15  ;;  %323 = vmatpush3.bf16.msra.mxu1 %v350_v15 }
  0x31   :  { %302 = vmatprep.subr.bf16.mxu0 %v351_v17  ;;  %324 = vmatprep.subr.bf16.mxu1 %v351_v17 }
  0x34   :  { %303 = vmatpush3.bf16.msra.mxu0 %v352_v20  ;;  %325 = vmatpush3.bf16.msra.mxu1 %v352_v20 }
  0x35   :  { %304 = vmatprep.subr.bf16.mxu0 %v353_v22  ;;  %326 = vmatprep.subr.bf16.mxu1 %v353_v22 }
  0x38   :  { %305 = vmatpush3.bf16.msra.mxu0 %v354_v24  ;;  %327 = vmatpush3.bf16.msra.mxu1 %v354_v24 }
  0x3b   :  { %210 = vmatmul.mubr.bf16.vlgmr.msra.gmra.mxu0 %v79_v25  ;;  %250 = vmatmul.mubr.bf16.vlgmr.msra.gmra.mxu1 %v73_v14 }
  0xfb   :  { %v306_v26 = vpop.f32.mrf.mxu0  ;;  %v328_v27 = vpop.f32.mrf.mxu1 }
  0xfd   :  { %v307_v28 = vpop.f32.mrf.mxu0  ;;  %v329_v29 = vpop.f32.mrf.mxu1 }
  0xfe   :  { %v308_v30 = vadd.f32 %v307_v28, %v306_v26  ;;  %v330_v31 = vadd.f32 %v329_v29, %v328_v27 }
  0xff   :  { %v309_v32 = vpop.f32.mrf.mxu0  ;;  %v331_v33 = vpop.f32.mrf.mxu1 }
 0x100   :  { %v252_v34 = vadd.f32 %v330_v31, %v308_v30 }
 0x101   :  { %v310_v35 = vpop.f32.mrf.mxu0  ;;  %v332_v36 = vpop.f32.mrf.mxu1 }
 0x102   :  { %257 = vst [vmem:[#allocation7] sm:$0xff] %v252_v34 }
 0x103   :  { %406 = shalt.err (!%p403_p0)
}
 0x104   :  { %267 = dma.vmem_to_hbm [thread:$0]  %s265_s1, 128, %s452_s2, [#allocation4]  }
 0x105   :  { %419 = dma.done.wait [#allocation4], 128  }
 0x106   :  { %420 = vsyncadd [#allocation4], 4294967168 }
 0x107   :  { %271 = vsyncpa [#allocation3], 1 }
 0x108   :  { %272 = vsyncpa [#allocation6], 1 }
 0x109   :  { %273 = vsyncpa [#allocation4], 1 }

</bundles_post_ra>
